<compile_context>
chip_gen: v5e
topology: v5e:2x2
jax: 0.10.0
libtpu: 0.0.40
codegen_flags: <defaults>
</compile_context>

<pallas_src>
import jax
import jax.numpy as jnp
from jax.experimental import pallas as pl
from jax.experimental.pallas import tpu as pltpu


def _round_up(x, m):
    return pl.cdiv(x, m) * m


def mlp2d_kernel(x_ref, w1_ref, b1_ref, w2_ref, b2_ref, wh_ref, bh_ref,
                 mu_ref, sigma_ref):
    C = mu_ref.shape[-1]
    wdt = w1_ref.dtype                                    # bf16 weight dtype

    x = x_ref[...].astype(wdt)                            # (TB, in_ch)

    # layer 1: bf16 x bf16 -> f32 acc, bias/relu in f32 (v5e has no bf16 VPU)
    h1 = jnp.dot(x, w1_ref[...], preferred_element_type=jnp.float32) + b1_ref[...]
    h1 = jnp.maximum(h1, 0.0)

    # layer 2
    h2 = jnp.dot(h1.astype(wdt), w2_ref[...],
                 preferred_element_type=jnp.float32) + b2_ref[...]
    h2 = jnp.maximum(h2, 0.0)

    # fused mu|sigma head: single (TB, C) x (C, 2C) matmul -> 256-wide MXU push
    heads = jnp.dot(h2.astype(wdt), wh_ref[...],
                    preferred_element_type=jnp.float32) + bh_ref[...]
    mu_ref[...] = heads[:, :C].astype(mu_ref.dtype)       # 128-aligned lane slice
    sigma_ref[...] = heads[:, C:].astype(sigma_ref.dtype)


def prepare_params(params, weight_dtype=jnp.bfloat16):
    """Hoisted (one-time) weight prep: mu|sigma head fusion + bf16 weight cast.

    Do this once at init / parameter-update time, NOT per forward call — the
    concat + casts are separate XLA ops that touch every weight in HBM.
    Returns kernel-ready params: (w1, b1, w2, b2, w_heads, b_heads) with
    weights in `weight_dtype` (bf16 -> half the weight DMA, native MXU rate on
    v6e/v7x) and biases in f32.
    """
    w1, b1, w2, b2, wmu, bmu, wsig, bsig = params
    w_heads = jnp.concatenate([wmu, wsig], axis=1)        # (mlp_ch, 2*mlp_ch)
    b_heads = jnp.concatenate([bmu, bsig], axis=1)        # (1, 2*mlp_ch)
    return (w1.astype(weight_dtype), b1.astype(jnp.float32),
            w2.astype(weight_dtype), b2.astype(jnp.float32),
            w_heads.astype(weight_dtype), b_heads.astype(jnp.float32))


def mlp2d_forward(style, prepared_params, out_dtype=jnp.float32):
    """style: (B, in_ch, 1, 1) NCHW. Returns (mu, sigma), each (B, mlp_ch, 1, 1).

    `prepared_params` comes from prepare_params().  Set out_dtype=jnp.bfloat16
    to halve output HBM traffic if the downstream AdaIN consumer tolerates it.
    """
    B = style.shape[0]
    x = style.reshape(B, -1).astype(jnp.float32)          # view(B, -1)
    in_ch = x.shape[1]
    w1, b1, w2, b2, wh, bh = prepared_params
    mlp_ch = w1.shape[1]

    # Batch tiling:
    #  * B <= 128: one tile, padded to a multiple of 8 (clean f32 sublane tile).
    #  * B  > 128: tiles up to 1024 rows (multiple of 128) to amortize the
    #    per-grid-step overhead and reach HBM streaming roofline, but capped so
    #    the grid has >= 2 steps — the "parallel" axis then feeds both v7x
    #    TensorCores and keeps each core's prefetch pipeline busy.
    if B <= 128:
        TB = _round_up(max(B, 1), 8)
    else:
        n_tiles = max(2, pl.cdiv(B, 1024))
        TB = _round_up(pl.cdiv(B, n_tiles), 128)
    Bp = _round_up(B, TB)
    if Bp != B:
        x = jnp.pad(x, ((0, Bp - B), (0, 0)))
    grid = (Bp // TB,)

    const2 = lambda i: (0, 0)                             # weights resident in VMEM
    batch_map = lambda i: (i, 0)

    def resident_spec(shape):
        # Constant index_map -> the block is DMA'd once and never changes, so a
        # single buffer suffices (default double buffering would waste VMEM).
        try:
            return pl.BlockSpec(shape, const2,
                                pipeline_mode=pl.Buffered(buffer_count=1))
        except Exception:  # older jax without pipeline_mode / Buffered
            return pl.BlockSpec(shape, const2)

    mu, sigma = pl.pallas_call(
        mlp2d_kernel,
        out_shape=(jax.ShapeDtypeStruct((Bp, mlp_ch), out_dtype),
                   jax.ShapeDtypeStruct((Bp, mlp_ch), out_dtype)),
        grid=grid,
        in_specs=[
            pl.BlockSpec((TB, in_ch), batch_map),         # x       : tiled over batch
            resident_spec((in_ch, mlp_ch)),               # w1      : DMA'd once
            resident_spec((1, mlp_ch)),                   # b1
            resident_spec((mlp_ch, mlp_ch)),              # w2
            resident_spec((1, mlp_ch)),                   # b2
            resident_spec((mlp_ch, 2 * mlp_ch)),          # w_heads (mu|sigma fused)
            resident_spec((1, 2 * mlp_ch)),               # b_heads
        ],
        out_specs=(pl.BlockSpec((TB, mlp_ch), batch_map),
                   pl.BlockSpec((TB, mlp_ch), batch_map)),
        compiler_params=pltpu.CompilerParams(
            dimension_semantics=("parallel",),
            vmem_limit_bytes=32 * 1024 * 1024),
    )(x, w1, b1, w2, b2, wh, bh)

    mu = mu[:B].reshape(B, mlp_ch, 1, 1)
    sigma = sigma[:B].reshape(B, mlp_ch, 1, 1)
    return mu, sigma
    # TODO(synk): highest remaining win is fusing the AdaIN scale-shift consumer
    # of (mu, sigma) into this kernel (output HBM traffic dominates the roofline);
    # only emit a single fused (TB, 2C) slab if that consumer reads it directly.


def init_params(key, in_ch=128, mlp_ch=128):
    """Deterministic init mimicking nn.Linear default (uniform(+-1/sqrt(fan_in))).
    Weights stored transposed: (in, out). Biases stored as (1, out)."""
    def linear(k, fan_in, fan_out):
        kw, kb = jax.random.split(k)
        bound = 1.0 / jnp.sqrt(fan_in)
        w = jax.random.uniform(kw, (fan_in, fan_out), jnp.float32, -bound, bound)
        b = jax.random.uniform(kb, (1, fan_out), jnp.float32, -bound, bound)
        return w, b

    k1, k2, k3, k4 = jax.random.split(key, 4)
    w1, b1 = linear(k1, in_ch, mlp_ch)
    w2, b2 = linear(k2, mlp_ch, mlp_ch)
    wmu, bmu = linear(k3, mlp_ch, mlp_ch)
    wsig, bsig = linear(k4, mlp_ch, mlp_ch)
    return (w1, b1, w2, b2, wmu, bmu, wsig, bsig)


def mlp2d_reference(style, params):
    """Pure-JAX reference mirroring the kernel's bf16-weight / f32-accumulate numerics."""
    B = style.shape[0]
    x = style.reshape(B, -1)
    w1, b1, w2, b2, wmu, bmu, wsig, bsig = params
    wdt = jnp.bfloat16

    def lin(a, w, b):
        return jnp.dot(a.astype(wdt), w.astype(wdt),
                       preferred_element_type=jnp.float32) + b

    h1 = jnp.maximum(lin(x, w1, b1), 0.0)
    h2 = jnp.maximum(lin(h1, w2, b2), 0.0)
    mu = lin(h2, wmu, bmu).reshape(B, -1, 1, 1)
    sigma = lin(h2, wsig, bsig).reshape(B, -1, 1, 1)
    return mu, sigma


if __name__ == "__main__":
    in_ch, mlp_ch = 128, 128
    key = jax.random.PRNGKey(0)
    k_params, k_small, k_large = jax.random.split(key, 3)

    params = init_params(k_params, in_ch=in_ch, mlp_ch=mlp_ch)
    prepared = jax.tree.map(jax.block_until_ready, prepare_params(params))
    fwd = jax.jit(mlp2d_forward)

    # small-B style-vector path (single tile)
    style = jax.random.normal(k_small, (8, in_ch, 1, 1), jnp.float32)
    mu, sigma = fwd(style, prepared)
    jax.block_until_ready((mu, sigma))
    mu_ref, sigma_ref = mlp2d_reference(style, params)
    assert mu.shape == (8, mlp_ch, 1, 1) and sigma.shape == (8, mlp_ch, 1, 1)
    # bf16 weights => relaxed tolerance vs. f32 PyTorch; tight vs. bf16 reference.
    assert jnp.allclose(mu, mu_ref, atol=1e-2, rtol=1e-2)
    assert jnp.allclose(sigma, sigma_ref, atol=1e-2, rtol=1e-2)

    # large-B path (multi-tile grid, non-multiple batch exercises padding)
    style_l = jax.random.normal(k_large, (300, in_ch, 1, 1), jnp.float32)
    mu_l, sigma_l = fwd(style_l, prepared)
    jax.block_until_ready((mu_l, sigma_l))
    mu_lr, sigma_lr = mlp2d_reference(style_l, params)
    assert mu_l.shape == (300, mlp_ch, 1, 1) and sigma_l.shape == (300, mlp_ch, 1, 1)
    assert jnp.allclose(mu_l, mu_lr, atol=1e-2, rtol=1e-2)
    assert jnp.allclose(sigma_l, sigma_lr, atol=1e-2, rtol=1e-2)

    print("KERNEL_OK")
</pallas_src>

<mosaic_0001>
module attributes {stable_mosaic.version = 11 : i64} {
  func.func @mlp2d_kernel(%arg0: i32, %arg1: memref<8x128xf32, #tpu.memory_space<vmem>>, %arg2: memref<128x128xbf16, #tpu.memory_space<vmem>>, %arg3: memref<1x128xf32, #tpu.memory_space<vmem>>, %arg4: memref<128x128xbf16, #tpu.memory_space<vmem>>, %arg5: memref<1x128xf32, #tpu.memory_space<vmem>>, %arg6: memref<128x256xbf16, #tpu.memory_space<vmem>>, %arg7: memref<1x256xf32, #tpu.memory_space<vmem>>, %arg8: memref<8x128xf32, #tpu.memory_space<vmem>>, %arg9: memref<8x128xf32, #tpu.memory_space<vmem>>) attributes {dimension_semantics = [#tpu.dimension_semantics<parallel>], iteration_bounds = array<i64: 1>, scalar_prefetch = 0 : i64, scratch_operands = 0 : i64, tpu.core_type = #tpu.core_type<tc>, window_params = [{transform_indices = @transform_0, window_bounds = array<i64: 8, 128>}, {pipeline_mode = #tpu.pipeline_mode<synchronous>, transform_indices = @transform_1, window_bounds = array<i64: 128, 128>}, {pipeline_mode = #tpu.pipeline_mode<synchronous>, transform_indices = @transform_2, window_bounds = array<i64: 1, 128>}, {pipeline_mode = #tpu.pipeline_mode<synchronous>, transform_indices = @transform_3, window_bounds = array<i64: 128, 128>}, {pipeline_mode = #tpu.pipeline_mode<synchronous>, transform_indices = @transform_4, window_bounds = array<i64: 1, 128>}, {pipeline_mode = #tpu.pipeline_mode<synchronous>, transform_indices = @transform_5, window_bounds = array<i64: 128, 256>}, {pipeline_mode = #tpu.pipeline_mode<synchronous>, transform_indices = @transform_6, window_bounds = array<i64: 1, 256>}, {transform_indices = @transform_7, window_bounds = array<i64: 8, 128>}, {transform_indices = @transform_8, window_bounds = array<i64: 8, 128>}]} {
    %c0 = arith.constant 0 : index
    %c0_0 = arith.constant 0 : index
    %0 = vector.load %arg1[%c0, %c0_0] : memref<8x128xf32, #tpu.memory_space<vmem>>, vector<8x128xf32>
    %1 = arith.truncf %0 : vector<8x128xf32> to vector<8x128xbf16>
    %c0_1 = arith.constant 0 : index
    %c0_2 = arith.constant 0 : index
    %2 = vector.load %arg2[%c0_1, %c0_2] : memref<128x128xbf16, #tpu.memory_space<vmem>>, vector<128x128xbf16>
    %cst = arith.constant dense<0.000000e+00> : vector<8x128xf32>
    %3 = tpu.matmul %1, %2, %cst {dimension_numbers = #tpu.dot_dimension_numbers<[1], [0], [0], [1], [0, 0, 1, 1], [], []>} : vector<8x128xbf16>, vector<128x128xbf16>, vector<8x128xf32> -> vector<8x128xf32>
    %c0_3 = arith.constant 0 : index
    %c0_4 = arith.constant 0 : index
    %4 = vector.load %arg3[%c0_3, %c0_4] : memref<1x128xf32, #tpu.memory_space<vmem>>, vector<1x128xf32>
    %5 = vector.broadcast %4 : vector<1x128xf32> to vector<8x128xf32>
    %6 = arith.addf %3, %5 : vector<8x128xf32>
    %cst_5 = arith.constant 0.000000e+00 : f32
    %7 = vector.broadcast %cst_5 : f32 to vector<8x128xf32>
    %8 = arith.maximumf %6, %7 : vector<8x128xf32>
    %9 = arith.truncf %8 : vector<8x128xf32> to vector<8x128xbf16>
    %c0_6 = arith.constant 0 : index
    %c0_7 = arith.constant 0 : index
    %10 = vector.load %arg4[%c0_6, %c0_7] : memref<128x128xbf16, #tpu.memory_space<vmem>>, vector<128x128xbf16>
    %cst_8 = arith.constant dense<0.000000e+00> : vector<8x128xf32>
    %11 = tpu.matmul %9, %10, %cst_8 {dimension_numbers = #tpu.dot_dimension_numbers<[1], [0], [0], [1], [0, 0, 1, 1], [], []>} : vector<8x128xbf16>, vector<128x128xbf16>, vector<8x128xf32> -> vector<8x128xf32>
    %c0_9 = arith.constant 0 : index
    %c0_10 = arith.constant 0 : index
    %12 = vector.load %arg5[%c0_9, %c0_10] : memref<1x128xf32, #tpu.memory_space<vmem>>, vector<1x128xf32>
    %13 = vector.broadcast %12 : vector<1x128xf32> to vector<8x128xf32>
    %14 = arith.addf %11, %13 : vector<8x128xf32>
    %cst_11 = arith.constant 0.000000e+00 : f32
    %15 = vector.broadcast %cst_11 : f32 to vector<8x128xf32>
    %16 = arith.maximumf %14, %15 : vector<8x128xf32>
    %17 = arith.truncf %16 : vector<8x128xf32> to vector<8x128xbf16>
    %c0_12 = arith.constant 0 : index
    %c0_13 = arith.constant 0 : index
    %18 = vector.load %arg6[%c0_12, %c0_13] : memref<128x256xbf16, #tpu.memory_space<vmem>>, vector<128x256xbf16>
    %cst_14 = arith.constant dense<0.000000e+00> : vector<8x256xf32>
    %19 = tpu.matmul %17, %18, %cst_14 {dimension_numbers = #tpu.dot_dimension_numbers<[1], [0], [0], [1], [0, 0, 1, 1], [], []>} : vector<8x128xbf16>, vector<128x256xbf16>, vector<8x256xf32> -> vector<8x256xf32>
    %c0_15 = arith.constant 0 : index
    %c0_16 = arith.constant 0 : index
    %20 = vector.load %arg7[%c0_15, %c0_16] : memref<1x256xf32, #tpu.memory_space<vmem>>, vector<1x256xf32>
    %21 = vector.broadcast %20 : vector<1x256xf32> to vector<8x256xf32>
    %22 = arith.addf %19, %21 : vector<8x256xf32>
    %23 = vector.extract_strided_slice %22 {offsets = [0, 0], sizes = [8, 128], strides = [1, 1]} : vector<8x256xf32> to vector<8x128xf32>
    %c0_17 = arith.constant 0 : index
    %c0_18 = arith.constant 0 : index
    %24 = vector.load %arg8[%c0_17, %c0_18] : memref<8x128xf32, #tpu.memory_space<vmem>>, vector<8x128xf32>
    tpu.vector_store %arg8[%c0_17, %c0_18], %23 {strides = array<i32>} : memref<8x128xf32, #tpu.memory_space<vmem>>, vector<8x128xf32>,
    %25 = vector.extract_strided_slice %22 {offsets = [0, 128], sizes = [8, 128], strides = [1, 1]} : vector<8x256xf32> to vector<8x128xf32>
    %c0_19 = arith.constant 0 : index
    %c0_20 = arith.constant 0 : index
    %26 = vector.load %arg9[%c0_19, %c0_20] : memref<8x128xf32, #tpu.memory_space<vmem>>, vector<8x128xf32>
    tpu.vector_store %arg9[%c0_19, %c0_20], %25 {strides = array<i32>} : memref<8x128xf32, #tpu.memory_space<vmem>>, vector<8x128xf32>,
    return
  }
  func.func @transform_0(%arg0: i32) -> (i32, i32) {
    %c0_i32 = arith.constant 0 : i32
    %c0_i32_0 = arith.constant 0 : i32
    return %arg0, %c0_i32 : i32, i32
  }
  func.func @transform_1(%arg0: i32) -> (i32, i32) {
    %c0_i32 = arith.constant 0 : i32
    %c0_i32_0 = arith.constant 0 : i32
    %c0_i32_1 = arith.constant 0 : i32
    return %c0_i32, %c0_i32_0 : i32, i32
  }
  func.func @transform_2(%arg0: i32) -> (i32, i32) {
    %c0_i32 = arith.constant 0 : i32
    %c0_i32_0 = arith.constant 0 : i32
    %c0_i32_1 = arith.constant 0 : i32
    return %c0_i32, %c0_i32_0 : i32, i32
  }
  func.func @transform_3(%arg0: i32) -> (i32, i32) {
    %c0_i32 = arith.constant 0 : i32
    %c0_i32_0 = arith.constant 0 : i32
    %c0_i32_1 = arith.constant 0 : i32
    return %c0_i32, %c0_i32_0 : i32, i32
  }
  func.func @transform_4(%arg0: i32) -> (i32, i32) {
    %c0_i32 = arith.constant 0 : i32
    %c0_i32_0 = arith.constant 0 : i32
    %c0_i32_1 = arith.constant 0 : i32
    return %c0_i32, %c0_i32_0 : i32, i32
  }
  func.func @transform_5(%arg0: i32) -> (i32, i32) {
    %c0_i32 = arith.constant 0 : i32
    %c0_i32_0 = arith.constant 0 : i32
    %c0_i32_1 = arith.constant 0 : i32
    return %c0_i32, %c0_i32_0 : i32, i32
  }
  func.func @transform_6(%arg0: i32) -> (i32, i32) {
    %c0_i32 = arith.constant 0 : i32
    %c0_i32_0 = arith.constant 0 : i32
    %c0_i32_1 = arith.constant 0 : i32
    return %c0_i32, %c0_i32_0 : i32, i32
  }
  func.func @transform_7(%arg0: i32) -> (i32, i32) {
    %c0_i32 = arith.constant 0 : i32
    %c0_i32_0 = arith.constant 0 : i32
    return %arg0, %c0_i32 : i32, i32
  }
  func.func @transform_8(%arg0: i32) -> (i32, i32) {
    %c0_i32 = arith.constant 0 : i32
    %c0_i32_0 = arith.constant 0 : i32
    return %arg0, %c0_i32 : i32, i32
  }
}

</mosaic_0001>

<bundles_post_ra>
// kernel: mlp2d_forward.1
= control target key start
LH: loop header
LB: loop body
LE: loop exit
PB: predicated region body
PF: predicated region fallthrough
CT: control target
= control target key end

     0   :  { %14 = vsyncpa [#allocation3], 0  ;;  %s832_s0 = inlined_call_operand.hbm [shape: f32[8,128], index: 0, kind: input, shape index: {}]   ;;  %s833_s1 = inlined_call_operand.hbm [shape: bf16[128,128], index: 1, kind: input, shape index: {}]   ;;  %s834_s2 = inlined_call_operand.vmem [shape: f32[1,128], index: 2, kind: input, shape index: {}]   ;;  %s835_s3 = inlined_call_operand.hbm [shape: bf16[128,128], index: 3, kind: input, shape index: {}]   ;;  %s836_s4 = inlined_call_operand.vmem [shape: f32[1,128], index: 4, kind: input, shape index: {}]   ;;  %s837_s5 = inlined_call_operand.hbm [shape: bf16[128,256], index: 5, kind: input, shape index: {}]   ;;  %s838_s6 = inlined_call_operand.vmem [shape: f32[1,256], index: 6, kind: input, shape index: {}]   ;;  %s839_s7 = inlined_call_operand.hbm [shape: f32[8,128], index: 7, kind: output, shape index: {0}]   ;;  %s840_s8 = inlined_call_operand.hbm [shape: f32[8,128], index: 8, kind: output, shape index: {1}]  }
   0x1   :  { %15 = vsyncpa [#allocation6], 0 }
   0x2   :  { %16 = vsyncpa [#allocation9], 0 }
   0x3   :  { %17 = vsyncpa [#allocation4], 0  ;;  %s34_s29 = sshll.u32 %s833_s1, 4  ;;  %s35_s29 = int_to_ptr.hbm [resolvable:$true] %s34_s29 }
   0x4   :  { %18 = vsyncpa [#allocation12], 0  ;;  %s750_s30 = smov [#allocation5]   ;;  %s24_s12 = sshll.u32 %s832_s0, 4  ;;  %s25_s12 = int_to_ptr.hbm [resolvable:$true] %s24_s12 }
   0x5   :  { %s36_s9 = sshll.u32 %s750_s30, 4  ;;  %s751_s13 = smov 64   ;;  %s37_s9 = int_to_ptr.vmem [resolvable:$true] %s36_s9 }
   0x6   :  { %s752_s14 = smov 4   ;;  %s753_s15 = smov [#allocation2]  }
   0x7   :  { %42 = dma.hbm_to_vmem [thread:$0]  %s35_s29, 1024, %s37_s9, [#allocation6], %s751_s13, %s751_s13, %s752_s14  }
   0x8   :  { %s26_s16 = sshll.u32 %s753_s15, 4  ;;  %s49_s19 = sshll.u32 %s835_s3, 4  ;;  %s27_s16 = int_to_ptr.vmem [resolvable:$true] %s26_s16  ;;  %s50_s19 = int_to_ptr.hbm [resolvable:$true] %s49_s19 }
   0x9   :  { %29 = dma.hbm_to_vmem [thread:$0]  %s25_s12, 128, %s27_s16, [#allocation3]  }
   0xa   :  { %s64_s21 = sshll.u32 %s837_s5, 4  ;;  %s754_s22 = smov [#allocation7]   ;;  %s65_s21 = int_to_ptr.hbm [resolvable:$true] %s64_s21 }
   0xb   :  { %s51_s23 = sshll.u32 %s754_s22, 4  ;;  %s755_s0 = smov [#allocation8]   ;;  %s52_s23 = int_to_ptr.vmem [resolvable:$true] %s51_s23 }
   0xc   :  { %57 = dma.hbm_to_vmem [thread:$0]  %s50_s19, 1024, %s52_s23, [#allocation6], %s751_s13, %s751_s13, %s752_s14  }
   0xd   :  { %s66_s24 = sshll.u32 %s755_s0, 4  ;;  %s756_s25 = smov 128   ;;  %s67_s24 = int_to_ptr.vmem [resolvable:$true] %s66_s24 }
   0xe   :  { %s757_s26 = smov 8  }
   0xf   :  { %72 = dma.hbm_to_vmem [thread:$0]  %s65_s21, 2048, %s67_s24, [#allocation9], %s756_s25, %s756_s25, %s757_s26  }
  0x10   :  { %740 = dma.done.wait [#allocation3], 128  }
  0x11   :  { %741 = vsyncadd [#allocation3], 4294967168 }
  0x12   :  { %742 = dma.done.wait [#allocation6], 2048  }
  0x13   :  { %743 = vsyncadd [#allocation6], 4294965248 }
  0x14   :  { %744 = dma.done.wait [#allocation9], 2048  }
  0x15   :  { %745 = vsyncadd [#allocation9], 4294965248  ;;  %v559_v0 = vld [vmem:[#allocation5 + $0x38] sm:$0xff]  ;;  %v558_v1 = vld [vmem:[#allocation5 + $0x30] sm:$0xff]  ;;  %s758_s30 = smov [#allocation10]   ;;  %s396_s12 = sshll.u32 %s839_s7, 4  ;;  %s397_s12 = int_to_ptr.hbm [resolvable:$true] %s396_s12 }
  0x16   :  { %161 = vmatpush.bf16.msra.mxu0 %v559_v0  ;;  %v567_v2 = vld [vmem:[#allocation7 + $0x38] sm:$0xff]  ;;  %v566_v3 = vld [vmem:[#allocation7 + $0x30] sm:$0xff]  ;;  %v557_v4 = vld [vmem:[#allocation5 + $0x28] sm:$0xff]  ;;  %s394_s9 = sshll.u32 %s758_s30, 4  ;;  %s407_s16 = sshll.u32 %s840_s8, 4  ;;  %s395_s9 = int_to_ptr.vmem [resolvable:$true] %s394_s9  ;;  %s408_s16 = int_to_ptr.hbm [resolvable:$true] %s407_s16 }
  0x17   :  { %244 = vmatpush.bf16.msra.mxu1 %v567_v2  ;;  %v565_v5 = vld [vmem:[#allocation7 + $0x28] sm:$0xff]  ;;  %v556_v6 = vld [vmem:[#allocation5 + $0x20] sm:$0xff]  ;;  %v555_v8 = vld [vmem:[#allocation5 + $0x18] sm:$0xff] }
  0x18   :  { %v564_v7 = vld [vmem:[#allocation7 + $0x20] sm:$0xff]  ;;  %v563_v9 = vld [vmem:[#allocation7 + $0x18] sm:$0xff]  ;;  %v554_v10 = vld [vmem:[#allocation5 + $0x10] sm:$0xff] }
  0x19   :  { %v562_v11 = vld [vmem:[#allocation7 + $0x10] sm:$0xff]  ;;  %v553_v12 = vld [vmem:[#allocation5 + $0x8] sm:$0xff]  ;;  %v552_v13 = vld [vmem:[#allocation5] sm:$0xff] }
  0x1a   :  { %162 = vmatpush.bf16.msra.mxu0 %v558_v1  ;;  %v91_v14 = vld [vmem:[#allocation2] sm:$0xff]  ;;  %v561_v16 = vld [vmem:[#allocation7 + $0x8] sm:$0xff]  ;;  %v560_v17 = vld [vmem:[#allocation7] sm:$0xff] }
  0x1b   :  { %245 = vmatpush.bf16.msra.mxu1 %v566_v3  ;;  %v92_v15 = vpack.c.bf16 %v91_v14, %v91_v14  ;;  %v546_v18 = vld [vmem:[#allocation8 + $0x70] sm:$0xf]  ;;  %v583_v19 = vld [vmem:[#allocation8 + $0x74] sm:$0xf0]  ;;  %v582_v20 = vld [vmem:[#allocation8 + $0x74] sm:$0xf] }
  0x1c   :  { %v547_v21 = vor.u32 %v583_v19, %v546_v18  ;;  %v548_v22 = vld [vmem:[#allocation8 + $0x78] sm:$0xf0]  ;;  %v538_v23 = vld [vmem:[#allocation8 + $0x60] sm:$0xf]  ;;  %v581_v24 = vld [vmem:[#allocation8 + $0x64] sm:$0xf0] }
  0x1d   :  { %v551_v25 = vor.u32 %v582_v20, %v548_v22  ;;  %v580_v26 = vld [vmem:[#allocation8 + $0x64] sm:$0xf]  ;;  %v540_v27 = vld [vmem:[#allocation8 + $0x68] sm:$0xf0]  ;;  %v539_v28 = vor.u32 %v581_v24, %v538_v23  ;;  %v530_v30 = vld [vmem:[#allocation8 + $0x50] sm:$0xf] }
  0x1e   :  { %163 = vmatpush.bf16.msra.mxu0 %v557_v4  ;;  %361 = vmatpush.bf16.msra.mxu2 %v547_v21  ;;  %v543_v29 = vor.u32 %v580_v26, %v540_v27  ;;  %v579_v31 = vld [vmem:[#allocation8 + $0x54] sm:$0xf0]  ;;  %v578_v32 = vld [vmem:[#allocation8 + $0x54] sm:$0xf]  ;;  %v532_v33 = vld [vmem:[#allocation8 + $0x58] sm:$0xf0] }
  0x1f   :  { %246 = vmatpush.bf16.msra.mxu1 %v565_v5  ;;  %374 = vmatpush.bf16.msra.mxu3 %v551_v25  ;;  %v531_v34 = vor.u32 %v579_v31, %v530_v30  ;;  %v535_v35 = vor.u32 %v578_v32, %v532_v33  ;;  %v522_v36 = vld [vmem:[#allocation8 + $0x40] sm:$0xf]  ;;  %v577_v37 = vld [vmem:[#allocation8 + $0x44] sm:$0xf0]  ;;  %v576_v38 = vld [vmem:[#allocation8 + $0x44] sm:$0xf] }
  0x20   :  { %v524_v39 = vld [vmem:[#allocation8 + $0x48] sm:$0xf0]  ;;  %v523_v40 = vor.u32 %v577_v37, %v522_v36  ;;  %v514_v42 = vld [vmem:[#allocation8 + $0x30] sm:$0xf]  ;;  %v575_v43 = vld [vmem:[#allocation8 + $0x34] sm:$0xf0] }
  0x21   :  { %v527_v41 = vor.u32 %v576_v38, %v524_v39  ;;  %v574_v44 = vld [vmem:[#allocation8 + $0x34] sm:$0xf]  ;;  %v516_v45 = vld [vmem:[#allocation8 + $0x38] sm:$0xf0]  ;;  %v515_v46 = vor.u32 %v575_v43, %v514_v42  ;;  %v506_v48 = vld [vmem:[#allocation8 + $0x20] sm:$0xf] }
  0x22   :  { %164 = vmatpush.bf16.msra.mxu0 %v556_v6  ;;  %362 = vmatpush.bf16.msra.mxu2 %v539_v28  ;;  %v519_v47 = vor.u32 %v574_v44, %v516_v45  ;;  %v573_v49 = vld [vmem:[#allocation8 + $0x24] sm:$0xf0]  ;;  %v572_v50 = vld [vmem:[#allocation8 + $0x24] sm:$0xf]  ;;  %v508_v51 = vld [vmem:[#allocation8 + $0x28] sm:$0xf0] }
  0x23   :  { %247 = vmatpush.bf16.msra.mxu1 %v564_v7  ;;  %375 = vmatpush.bf16.msra.mxu3 %v543_v29  ;;  %v507_v52 = vor.u32 %v573_v49, %v506_v48  ;;  %v511_v53 = vor.u32 %v572_v50, %v508_v51  ;;  %v594_v54 = vld [vmem:[%s834_s2] ss:$0 sm:$0xff]  ;;  %v498_v60 = vld [vmem:[#allocation8 + $0x10] sm:$0xf]  ;;  %v570_v62 = vld [vmem:[#allocation8 + $0x14] sm:$0xf] }
  0x24   :  { %v571_v61 = vld [vmem:[#allocation8 + $0x14] sm:$0xf0]  ;;  %v500_v0 = vld [vmem:[#allocation8 + $0x18] sm:$0xf0]  ;;  %v490_v2 = vld [vmem:[#allocation8] sm:$0xf] }
  0x25   :  { %v499_v63 = vor.u32 %v571_v61, %v498_v60  ;;  %v503_v1 = vor.u32 %v570_v62, %v500_v0  ;;  %v569_v3 = vld [vmem:[#allocation8 + $0x4] sm:$0xf0]  ;;  %v568_v4 = vld [vmem:[#allocation8 + $0x4] sm:$0xf]  ;;  %v492_v6 = vld [vmem:[#allocation8 + $0x8] sm:$0xf0] }
  0x26   :  { %165 = vmatpush.bf16.msra.mxu0 %v555_v8  ;;  %363 = vmatpush.bf16.msra.mxu2 %v531_v34  ;;  %v491_v5 = vor.u32 %v569_v3, %v490_v2  ;;  %v495_v7 = vor.u32 %v568_v4, %v492_v6  ;;  %v595_v8 = vld [vmem:[%s836_s4] ss:$0 sm:$0xff]  ;;  %s759_s4 = smov [#allocation11]  }
  0x27   :  { %248 = vmatpush.bf16.msra.mxu1 %v563_v9  ;;  %376 = vmatpush.bf16.msra.mxu3 %v535_v35  ;;  %v275_v14 = vld [vmem:[%s838_s6] sm:$0x3]  ;;  %s405_s13 = sshll.u32 %s759_s4, 4  ;;  %s406_s13 = int_to_ptr.vmem [resolvable:$true] %s405_s13 }
  0x2a   :  { %166 = vmatpush.bf16.msra.mxu0 %v554_v10  ;;  %364 = vmatpush.bf16.msra.mxu2 %v523_v40 }
  0x2b   :  { %249 = vmatpush.bf16.msra.mxu1 %v562_v11  ;;  %377 = vmatpush.bf16.msra.mxu3 %v527_v41 }
  0x2e   :  { %167 = vmatpush.bf16.msra.mxu0 %v553_v12  ;;  %365 = vmatpush.bf16.msra.mxu2 %v515_v46 }
  0x2f   :  { %250 = vmatpush.bf16.msra.mxu1 %v561_v16  ;;  %378 = vmatpush.bf16.msra.mxu3 %v519_v47  ;;  %v278_v16 = vperm.slane %v275_v14, 1 }
  0x32   :  { %168 = vmatpush.bf16.msra.mxu0 %v552_v13  ;;  %366 = vmatpush.bf16.msra.mxu2 %v507_v52 }
  0x33   :  { %251 = vmatpush.bf16.msra.mxu1 %v560_v17  ;;  %379 = vmatpush.bf16.msra.mxu3 %v511_v53 }
  0x35   :  { %169 = vmatmul.bf16.vlgmr.msra.gmra.mxu0 %v92_v15  ;;  %v277_v15 = vperm.slane %v275_v14, 0 }
  0x36   :  { %367 = vmatpush.bf16.msra.mxu2 %v499_v63 }
  0x37   :  { %380 = vmatpush.bf16.msra.mxu3 %v503_v1 }
  0x3a   :  { %368 = vmatpush.bf16.msra.mxu2 %v491_v5 }
  0x3b   :  { %381 = vmatpush.bf16.msra.mxu3 %v495_v7 }
  0xb2   :  { %v170_v55 = vpop.f32.mrf.mxu0 }
  0xb3   :  { %v171_v56 = vadd.f32 %v594_v54, %v170_v55 }
  0xb5   :  { %v174_v57 = vmax.f32 %v171_v56, 0.0 }
  0xb7   :  { %v175_v58 = vpack.c.bf16 %v174_v57, %v174_v57 }
  0xb9   :  { %252 = vmatmul.bf16.vlgmr.msra.gmra.mxu1 %v175_v58 }
  0xba   :  { %v172_v59 = vpop.f32.mrf.mxu0 }
 0x136   :  { %v253_v9 = vpop.f32.mrf.mxu1 }
 0x137   :  { %v254_v10 = vadd.f32 %v595_v8, %v253_v9 }
 0x139   :  { %v257_v11 = vmax.f32 %v254_v10, 0.0 }
 0x13b   :  { %v258_v12 = vpack.c.bf16 %v257_v11, %v257_v11 }
 0x13d   :  { %369 = vmatmul.bf16.vlgmr.msra.gmra.mxu2 %v258_v12  ;;  %382 = vmatmul.bf16.vlgmr.msra.gmra.mxu3 %v258_v12 }
 0x13e   :  { %v255_v13 = vpop.f32.mrf.mxu1 }
 0x1c0   :  { %v370_v17 = vpop.f32.mrf.mxu2  ;;  %v383_v18 = vpop.f32.mrf.mxu3 }
 0x1c1   :  { %v371_v19 = vadd.f32 %v370_v17, %v277_v15  ;;  %v384_v20 = vadd.f32 %v383_v18, %v278_v16 }
 0x1c3   :  { %387 = vst [vmem:[#allocation10] sm:$0xff] %v371_v19 }
 0x1c4   :  { %388 = vst [vmem:[#allocation11] sm:$0xff] %v384_v20  ;;  %399 = dma.vmem_to_hbm [thread:$0]  %s395_s9, 128, %s397_s12, [#allocation4]  }
 0x1c5   :  { %410 = dma.vmem_to_hbm [thread:$0]  %s406_s13, 128, %s408_s16, [#allocation12]  }
 0x1c8   :  { %v372_v21 = vpop.f32.mrf.mxu2  ;;  %v385_v22 = vpop.f32.mrf.mxu3 }
 0x1c9   :  { %746 = dma.done.wait [#allocation4], 128  }
 0x1ca   :  { %747 = vsyncadd [#allocation4], 4294967168 }
 0x1cb   :  { %748 = dma.done.wait [#allocation12], 128  }
 0x1cc   :  { %749 = vsyncadd [#allocation12], 4294967168 }
 0x1cd   :  { %419 = vsyncpa [#allocation3], 1 }
 0x1ce   :  { %420 = vsyncpa [#allocation6], 1 }
 0x1cf   :  { %421 = vsyncpa [#allocation9], 1 }
 0x1d0   :  { %422 = vsyncpa [#allocation4], 1 }
 0x1d1   :  { %423 = vsyncpa [#allocation12], 1 }

</bundles_post_ra>
